<compile_context>
chip_gen: v5e
topology: v5e:2x2
jax: 0.10.0
libtpu: 0.0.40
codegen_flags: <defaults>
</compile_context>

<pallas_src>
import functools
import math

import jax
import jax.numpy as jnp
from jax.experimental import pallas as pl
from jax.experimental.pallas import tpu as pltpu


# ----------------------------------------------------------------------------
# VMEM budget: derive from the chip, leave headroom.
# ----------------------------------------------------------------------------
_VMEM_LIMIT_CACHE = None


def _vmem_limit_bytes():
    global _VMEM_LIMIT_CACHE
    if _VMEM_LIMIT_CACHE is None:
        try:
            cap = int(pltpu.get_tpu_info().vmem_capacity_bytes)
        except Exception:
            cap = 64 * 1024 * 1024  # safe everywhere (v7x physical VMEM)
        # ~20% headroom for compiler scratch / semaphores / double-buffer
        # overshoot; cap so v5e/v6e never request more than ~112 MiB.
        _VMEM_LIMIT_CACHE = min(int(cap * 0.8), 112 * 1024 * 1024)
    return _VMEM_LIMIT_CACHE


def _pick_tile(dim, pref):
    """Largest power-of-two-ish tile <= pref that divides dim (else full extent)."""
    if dim <= pref:
        return dim
    t = pref
    while t >= 8:
        if dim % t == 0:
            return t
        t //= 2
    return dim


def _round_up(x, m):
    return ((x + m - 1) // m) * m


# ----------------------------------------------------------------------------
# Grouped tiled matmul kernel:  y[g] = x[g] @ w[g]   (weights pre-transposed)
# ----------------------------------------------------------------------------
def _grouped_matmul_kernel(x_ref, w_ref, o_ref, acc_ref):
    @pl.when(pl.program_id(3) == 0)
    def _():
        acc_ref[...] = jnp.zeros(acc_ref.shape, acc_ref.dtype)

    acc_ref[...] += jnp.dot(x_ref[0], w_ref[0],
                            preferred_element_type=jnp.float32)

    @pl.when(pl.program_id(3) == pl.num_programs(3) - 1)
    def _():
        o_ref[0] = acc_ref[...].astype(o_ref.dtype)


def grouped_linear(x, w, *, out_dtype):
    """x: (G, M, K), w: (G, K, N) -> (G, M, N), f32 MXU accumulation."""
    G, M, K = x.shape
    G2, K2, N = w.shape
    assert G == G2 and K == K2
    tm = _pick_tile(M, 512)
    tn = _pick_tile(N, 512)
    tk = _pick_tile(K, 512)
    grid = (G, M // tm, N // tn, K // tk)
    return pl.pallas_call(
        _grouped_matmul_kernel,
        out_shape=jax.ShapeDtypeStruct((G, M, N), out_dtype),
        grid_spec=pltpu.PrefetchScalarGridSpec(
            num_scalar_prefetch=0,
            grid=grid,
            in_specs=[
                pl.BlockSpec((1, tm, tk), lambda g, i, j, kk: (g, i, kk)),
                pl.BlockSpec((1, tk, tn), lambda g, i, j, kk: (g, kk, j)),
            ],
            out_specs=pl.BlockSpec((1, tm, tn), lambda g, i, j, kk: (g, i, j)),
            scratch_shapes=[pltpu.VMEM((tm, tn), jnp.float32)],
        ),
        compiler_params=pltpu.CompilerParams(
            dimension_semantics=("parallel", "parallel", "parallel", "arbitrary"),
            vmem_limit_bytes=_vmem_limit_bytes()),
    )(x, w)


# ----------------------------------------------------------------------------
# Flash-style attention kernel:
#   grid = (B, q-tiles, kv-tiles); all heads handled per grid step so the
#   (tq, tkv) bias tile is DMA'd once per (b, qi, ki), Q/K/V stay in (B, S, D)
#   layout, and the output block (1, tq, D) is lane-dense.
# ----------------------------------------------------------------------------
def _flash_attn_kernel(q_ref, k_ref, v_ref, bias_ref, o_ref,
                       m_sc, l_sc, acc_sc, *, h, d_k):
    ki = pl.program_id(2)

    @pl.when(ki == 0)
    def _():
        m_sc[...] = jnp.full(m_sc.shape, -jnp.inf, m_sc.dtype)
        l_sc[...] = jnp.zeros(l_sc.shape, l_sc.dtype)
        acc_sc[...] = jnp.zeros(acc_sc.shape, acc_sc.dtype)

    bias = bias_ref[0].astype(jnp.float32)              # (tq, tkv), shared by heads

    for hi in range(h):                                  # static unroll over heads
        dsl = pl.ds(hi * d_k, d_k)                       # head slice of the D axis
        msl = pl.ds(hi, 1)                               # head column of m/l scratch

        qh = q_ref[0, :, dsl]                            # (tq,  d_k)
        kh = k_ref[0, :, dsl]                            # (tkv, d_k)
        vh = v_ref[0, :, dsl]                            # (tkv, d_k)

        # scores = (Q * 1/sqrt(d_k)) @ K.T + bias   (scale folded into W_q)
        s = jax.lax.dot_general(
            qh, kh, (((1,), (1,)), ((), ())),
            preferred_element_type=jnp.float32) + bias

        # online softmax, all softmax math in f32 (v5e has no bf16 VPU/EUP)
        m_prev = m_sc[:, msl]                            # (tq, 1)
        m_new = jnp.maximum(m_prev, jnp.max(s, axis=-1, keepdims=True))
        alpha = jnp.exp(m_prev - m_new)
        p = jnp.exp(s - m_new)

        l_sc[:, msl] = alpha * l_sc[:, msl] + jnp.sum(p, axis=-1, keepdims=True)
        pv = jax.lax.dot_general(
            p.astype(vh.dtype), vh, (((1,), (0,)), ((), ())),
            preferred_element_type=jnp.float32)
        acc_sc[:, dsl] = alpha * acc_sc[:, dsl] + pv
        m_sc[:, msl] = m_new

    @pl.when(ki == pl.num_programs(2) - 1)
    def _():
        for hi in range(h):
            dsl = pl.ds(hi * d_k, d_k)
            inv_l = pl.reciprocal(l_sc[:, pl.ds(hi, 1)], approx=True)
            o_ref[0, :, dsl] = (acc_sc[:, dsl] * inv_l).astype(o_ref.dtype)


def flash_attention(q, k, v, bias, *, h, tq, tkv):
    """q, k, v: (B, S, D) head-concatenated; bias: (B, S, S) additive, bf16."""
    B, S, D = q.shape
    d_k = D // h
    grid = (B, S // tq, S // tkv)
    kernel = functools.partial(_flash_attn_kernel, h=h, d_k=d_k)
    return pl.pallas_call(
        kernel,
        out_shape=jax.ShapeDtypeStruct((B, S, D), q.dtype),
        grid_spec=pltpu.PrefetchScalarGridSpec(
            num_scalar_prefetch=0,
            grid=grid,
            in_specs=[
                pl.BlockSpec((1, tq, D), lambda b, qi, ki: (b, qi, 0)),
                pl.BlockSpec((1, tkv, D), lambda b, qi, ki: (b, ki, 0)),
                pl.BlockSpec((1, tkv, D), lambda b, qi, ki: (b, ki, 0)),
                pl.BlockSpec((1, tq, tkv), lambda b, qi, ki: (b, qi, ki)),
            ],
            out_specs=pl.BlockSpec((1, tq, D), lambda b, qi, ki: (b, qi, 0)),
            scratch_shapes=[
                pltpu.VMEM((tq, h), jnp.float32),    # running max m (per head)
                pltpu.VMEM((tq, h), jnp.float32),    # running sum l (per head)
                pltpu.VMEM((tq, D), jnp.float32),    # output accumulator
            ],
        ),
        compiler_params=pltpu.CompilerParams(
            dimension_semantics=("parallel", "parallel", "arbitrary"),
            vmem_limit_bytes=_vmem_limit_bytes()),
    )(q, k, v, bias)


# ----------------------------------------------------------------------------
# Full forward pass wrapper (matches the PyTorch module semantics)
# ----------------------------------------------------------------------------
def multi_head_attention(q, k, v, mask, wq, wk, wv, wo, *, h,
                         compute_dtype=jnp.bfloat16):
    B, S, D = q.shape
    d_k = D // h
    cd = compute_dtype

    # ---- fused Q/K/V projection (one pallas_call, pre-transposed weights) ----
    # Note: q, k, v may be distinct tensors (cross-attention), so activations are
    # batched along a group axis rather than sharing one activation read.
    wq_t = (wq * (1.0 / math.sqrt(d_k))).T               # fold score scale into W_q
    w_stack = jnp.stack([wq_t, wk.T, wv.T], axis=0).astype(cd)      # (3, D, D)
    x_stack = jnp.stack([q, k, v], axis=0).reshape(3, B * S, D).astype(cd)

    qkv = grouped_linear(x_stack, w_stack, out_dtype=cd)            # (3, B*S, D)
    Q = qkv[0].reshape(B, S, D)
    K = qkv[1].reshape(B, S, D)
    V = qkv[2].reshape(B, S, D)

    # ---- attention tile choice + sequence padding to a multiple of the tile ----
    if S <= 128:
        tq = tkv = S
        S_pad = S
    else:
        tq = 128
        S_pad = _round_up(S, tq)
        tkv = 256 if S_pad % 256 == 0 else 128

    # Additive attention bias (broadcast over heads), computed once in the wrapper.
    neg = jnp.float32(-1000000000.0)
    bias = jnp.where(mask[:, 0] == 0, neg, jnp.float32(0.0))        # (B, S, S)
    if S_pad != S:
        bias_full = jnp.full((B, S_pad, S_pad), neg, jnp.float32)   # padded keys masked
        bias = bias_full.at[:, :S, :S].set(bias)
        pad = ((0, 0), (0, S_pad - S), (0, 0))
        Q = jnp.pad(Q, pad)
        K = jnp.pad(K, pad)
        V = jnp.pad(V, pad)
    bias = bias.astype(cd)

    attn = flash_attention(Q, K, V, bias, h=h, tq=tq, tkv=tkv)      # (B, S_pad, D)
    attn = attn[:, :S]                                              # drop padding

    # ---- output projection W_o (pre-transposed, same grouped kernel, G=1) ----
    out = grouped_linear(attn.reshape(1, B * S, D),
                         wo.T.astype(cd)[None],
                         out_dtype=jnp.float32)
    return out[0].reshape(B, S, D)


# ----------------------------------------------------------------------------
# Pure-JAX f32 reference mirroring the PyTorch module
# ----------------------------------------------------------------------------
def reference_mha(q, k, v, mask, wq, wk, wv, wo, *, h):
    B, S, D = q.shape
    d_k = D // h
    Q = q @ wq.T
    K = k @ wk.T
    V = v @ wv.T
    Q = Q.reshape(B, S, h, d_k).transpose(0, 2, 1, 3)
    K = K.reshape(B, S, h, d_k).transpose(0, 2, 1, 3)
    V = V.reshape(B, S, h, d_k).transpose(0, 2, 1, 3)
    scores = jnp.einsum('bhqd,bhkd->bhqk', Q, K) / math.sqrt(d_k)
    scores = jnp.where(mask == 0, -1000000000.0, scores)
    p = jax.nn.softmax(scores, axis=-1)
    x = jnp.einsum('bhqk,bhkd->bhqd', p, V)
    x = x.transpose(0, 2, 1, 3).reshape(B, S, D)
    return x @ wo.T


if __name__ == "__main__":
    B, S, d_model, h = 2, 8, 32, 4

    key = jax.random.PRNGKey(0)
    kq, kk_, kv_, kwq, kwk, kwv, kwo, kmask = jax.random.split(key, 8)

    q = jax.random.normal(kq, (B, S, d_model), dtype=jnp.float32)
    k = jax.random.normal(kk_, (B, S, d_model), dtype=jnp.float32)
    v = jax.random.normal(kv_, (B, S, d_model), dtype=jnp.float32)

    # deterministic parameter init (Linear weights, shape (out, in), no bias)
    scale = 1.0 / math.sqrt(d_model)
    wq = jax.random.uniform(kwq, (d_model, d_model), jnp.float32, -scale, scale)
    wk = jax.random.uniform(kwk, (d_model, d_model), jnp.float32, -scale, scale)
    wv = jax.random.uniform(kwv, (d_model, d_model), jnp.float32, -scale, scale)
    wo = jax.random.uniform(kwo, (d_model, d_model), jnp.float32, -scale, scale)

    # random 0/1 mask, broadcast over heads, guaranteed at least diagonal visible
    mask = (jax.random.uniform(kmask, (B, 1, S, S)) > 0.3).astype(jnp.int32)
    mask = jnp.maximum(mask, jnp.eye(S, dtype=jnp.int32)[None, None])

    out = multi_head_attention(q, k, v, mask, wq, wk, wv, wo, h=h)
    out = jax.block_until_ready(out)

    ref = reference_mha(q, k, v, mask, wq, wk, wv, wo, h=h)
    # bf16 matmul operands + approx reciprocal -> looser tolerance than pure f32.
    assert jnp.allclose(out, ref, atol=5e-2, rtol=5e-2), (
        f"mismatch: max abs err {jnp.max(jnp.abs(out - ref))}")

    print("KERNEL_OK")
</pallas_src>

<mosaic_0001>
module attributes {stable_mosaic.version = 11 : i64} {
  func.func @_grouped_matmul_kernel(%arg0: i32, %arg1: i32, %arg2: i32, %arg3: i32, %arg4: memref<1x16x32xbf16, #tpu.memory_space<vmem>>, %arg5: memref<1x32x32xbf16, #tpu.memory_space<vmem>>, %arg6: memref<1x16x32xbf16, #tpu.memory_space<vmem>>, %arg7: memref<16x32xf32, #tpu.memory_space<vmem>>) attributes {dimension_semantics = [#tpu.dimension_semantics<parallel>, #tpu.dimension_semantics<parallel>, #tpu.dimension_semantics<parallel>, #tpu.dimension_semantics<arbitrary>], iteration_bounds = array<i64: 3, 1, 1, 1>, scalar_prefetch = 0 : i64, scratch_operands = 1 : i64, tpu.core_type = #tpu.core_type<tc>, window_params = [{transform_indices = @transform_0, window_bounds = array<i64: 1, 16, 32>}, {transform_indices = @transform_1, window_bounds = array<i64: 1, 32, 32>}, {transform_indices = @transform_2, window_bounds = array<i64: 1, 16, 32>}]} {
    %c0_i32 = arith.constant 0 : i32
    %0 = arith.cmpi eq, %arg3, %c0_i32 : i32
    %1 = arith.extui %0 : i1 to i32
    %c0_i32_0 = arith.constant 0 : i32
    %2 = arith.cmpi ne, %1, %c0_i32_0 : i32
    scf.if %2 {
      %cst_12 = arith.constant 0.000000e+00 : f32
      %14 = vector.broadcast %cst_12 : f32 to vector<16x32xf32>
      %c0_13 = arith.constant 0 : index
      %c0_14 = arith.constant 0 : index
      %15 = vector.load %arg7[%c0_13, %c0_14] : memref<16x32xf32, #tpu.memory_space<vmem>>, vector<16x32xf32>
      tpu.vector_store %arg7[%c0_13, %c0_14], %14 {strides = array<i32>} : memref<16x32xf32, #tpu.memory_space<vmem>>, vector<16x32xf32>,
    } else {
    }
    %c0 = arith.constant 0 : index
    %c0_1 = arith.constant 0 : index
    %3 = vector.load %arg7[%c0, %c0_1] : memref<16x32xf32, #tpu.memory_space<vmem>>, vector<16x32xf32>
    %c0_2 = arith.constant 0 : index
    %c0_3 = arith.constant 0 : index
    %c0_4 = arith.constant 0 : index
    %4 = vector.load %arg4[%c0_2, %c0_3, %c0_4] : memref<1x16x32xbf16, #tpu.memory_space<vmem>>, vector<1x16x32xbf16>
    %5 = vector.shape_cast %4 : vector<1x16x32xbf16> to vector<16x32xbf16>
    %c0_5 = arith.constant 0 : index
    %c0_6 = arith.constant 0 : index
    %c0_7 = arith.constant 0 : index
    %6 = vector.load %arg5[%c0_5, %c0_6, %c0_7] : memref<1x32x32xbf16, #tpu.memory_space<vmem>>, vector<1x32x32xbf16>
    %7 = vector.shape_cast %6 : vector<1x32x32xbf16> to vector<32x32xbf16>
    %cst = arith.constant dense<0.000000e+00> : vector<16x32xf32>
    %8 = tpu.matmul %5, %7, %cst {dimension_numbers = #tpu.dot_dimension_numbers<[1], [0], [0], [1], [0, 0, 1, 1], [], []>} : vector<16x32xbf16>, vector<32x32xbf16>, vector<16x32xf32> -> vector<16x32xf32>
    %9 = arith.addf %3, %8 : vector<16x32xf32>
    %c0_8 = arith.constant 0 : index
    %c0_9 = arith.constant 0 : index
    %10 = vector.load %arg7[%c0_8, %c0_9] : memref<16x32xf32, #tpu.memory_space<vmem>>, vector<16x32xf32>
    tpu.vector_store %arg7[%c0_8, %c0_9], %9 {strides = array<i32>} : memref<16x32xf32, #tpu.memory_space<vmem>>, vector<16x32xf32>,
    %c0_i32_10 = arith.constant 0 : i32
    %11 = arith.cmpi eq, %arg3, %c0_i32_10 : i32
    %12 = arith.extui %11 : i1 to i32
    %c0_i32_11 = arith.constant 0 : i32
    %13 = arith.cmpi ne, %12, %c0_i32_11 : i32
    scf.if %13 {
      %c0_12 = arith.constant 0 : index
      %c0_13 = arith.constant 0 : index
      %14 = vector.load %arg7[%c0_12, %c0_13] : memref<16x32xf32, #tpu.memory_space<vmem>>, vector<16x32xf32>
      %15 = arith.truncf %14 : vector<16x32xf32> to vector<16x32xbf16>
      %c0_14 = arith.constant 0 : index
      %c0_15 = arith.constant 0 : index
      %c0_16 = arith.constant 0 : index
      %16 = vector.load %arg6[%c0_14, %c0_15, %c0_16] : memref<1x16x32xbf16, #tpu.memory_space<vmem>>, vector<1x16x32xbf16>
      %17 = vector.shape_cast %16 : vector<1x16x32xbf16> to vector<16x32xbf16>
      %18 = vector.shape_cast %15 : vector<16x32xbf16> to vector<1x16x32xbf16>
      tpu.vector_store %arg6[%c0_14, %c0_15, %c0_16], %18 {strides = array<i32>} : memref<1x16x32xbf16, #tpu.memory_space<vmem>>, vector<1x16x32xbf16>,
    } else {
    }
    return
  }
  func.func @transform_0(%arg0: i32, %arg1: i32, %arg2: i32, %arg3: i32) -> (i32, i32, i32) {
    %c0_i32 = arith.constant 0 : i32
    return %arg0, %arg1, %arg3 : i32, i32, i32
  }
  func.func @transform_1(%arg0: i32, %arg1: i32, %arg2: i32, %arg3: i32) -> (i32, i32, i32) {
    %c0_i32 = arith.constant 0 : i32
    return %arg0, %arg3, %arg2 : i32, i32, i32
  }
  func.func @transform_2(%arg0: i32, %arg1: i32, %arg2: i32, %arg3: i32) -> (i32, i32, i32) {
    %c0_i32 = arith.constant 0 : i32
    return %arg0, %arg1, %arg2 : i32, i32, i32
  }
}

</mosaic_0001>

<bundles_post_ra>
// kernel: tpu_custom_call.1
= control target key start
LH: loop header
LB: loop body
LE: loop exit
PB: predicated region body
PF: predicated region fallthrough
CT: control target
= control target key end

     0   :  { %7 = vsyncpa [#allocation4], 0  ;;  %s888_s0 = inlined_call_operand.hbm [shape: bf16[3,16,32], index: 0, kind: input, shape index: {}]   ;;  %s889_s1 = inlined_call_operand.hbm [shape: bf16[3,32,32], index: 1, kind: input, shape index: {}]   ;;  %s890_s2 = inlined_call_operand.hbm [shape: bf16[3,16,32], index: 2, kind: output, shape index: {}]  }
   0x1   :  { %9 = vsyncpa [#allocation4 + $0x1], 0 }
   0x2   :  { %10 = vsyncpa [#allocation7], 0 }
   0x3   :  { %12 = vsyncpa [#allocation7 + $0x1], 0 }
   0x4   :  { %13 = vsyncpa [#allocation5], 0 }
   0x5   :  { %15 = vsyncpa [#allocation5 + $0x1], 0  ;;  %s737_s9 = smov 0   ;;  %s739_s10 = smov 0  }
   0x6   :  { %s741_s11 = smov 0   ;;  %s743_s12 = smov 0  }
   0x7   :  { %s745_s13 = smov 0   ;;  %s747_s14 = smov 0  }
   0x8 LB: > { %s459_s15 = sadd.s32 4294967295, %s715_s14   ;;  %s460_s16 = sadd.s32 4294967294, %s715_s14   ;;  %s715_s14 = sphi %s747_s14, %s21_s14   ;;  %s711_s13 = sphi %s745_s13, %s900_s13   ;;  %s707_s12 = sphi %s743_s12, %s899_s12   ;;  %s703_s11 = sphi %s741_s11, %s898_s11   ;;  %s699_s10 = sphi %s739_s10, %s897_s10   ;;  %s695_s9 = sphi %s737_s9, %s896_s9  }
   0x9   : > { %s47_s17 = sadd.s32 1, %s711_s13  ;;  %s58_s18 = sadd.s32 1, %s703_s11 }
   0xa   : > { %p49_p0 = scmp.ge.s32.totalorder %s47_s17, 3  ;;  %p65_p1 = scmp.ne.s32.totalorder %s703_s11, %s699_s10 }
   0xb   : > { %p66_p2 = scmp.eq.s32.totalorder %s715_s14, 0  ;;  %p71_p3 = scmp.ne.s32.totalorder %s699_s10, %s695_s9 }
   0xc   : > { %s902_s17 = smov (%p49_p0, %s47_s17), 0  ;;  %p72_p5 = scmp.eq.s32.totalorder %s459_s15, 0 }
   0xd   : > { %p778_p4 = por %p66_p2, %p65_p1  ;;  %s51_s20 = ssub.s32 %s711_s13, %s902_s17 }
   0xe   : > { %p129_p6 = scmp.eq.s32.totalorder %s459_s15, 2  ;;  %p56_p7 = scmp.eq.s32.totalorder %s51_s20, 0 }
   0xf   : > { %p784_p8 = por %p72_p5, %p71_p3  ;;  %p135_p10 = scmp.eq.s32.totalorder %s460_s16, 2 }
  0x10   : > { %p788_p9 = por %p129_p6, %p65_p1  ;;  %p514_p12 = scmp.lt.s32.totalorder %s715_s14, 3 }
  0x11   : > { %s793_s23 = scalar_select %p56_p7, %s703_s11, %s58_s18  }
  0x12   : > { %p795_p11 = por %p135_p10, %p71_p3  ;;  %s801_s25 = sand.u32 1, %s703_s11  }
  0x13   : > { %s463_s26 = sshll.u32 %s801_s25, 3  ;;  %s491_s27 = sshll.u32 %s711_s13, 3 }
  0x14   : > { %s167_s30 = scalar_lea.hbm %s888_s0, %s491_s27  ;;  %s159_s3 = scalar_lea.vmem [#allocation3], %s463_s26 }
  0x15   : > { %s170_s4 = sshll.u32 %s159_s3, 4  ;;  %s168_s5 = sshll.u32 %s167_s30, 4  ;;  %s171_s4 = int_to_ptr.vmem [resolvable:$true] %s170_s4  ;;  %s169_s5 = int_to_ptr.hbm [resolvable:$true] %s168_s5 }
  0x16   : > { %p810_p13 = pnand %p514_p12, %p778_p4  ;;  %p469_p0 = scmp.ge.s32.totalorder %s715_s14, 1 }
  0x17   : > { %s156_s7 = scalar_lea.sflag [#allocation4], %s801_s25  ;;  %s717_s8 = smov 64  }
  0x18   : > { %s718_s15 = smov 4   ;;  %p203_p1 = scmp.lt.s32.totalorder %s715_s14, 4 }
  0x19   : > { %506 = dma.hbm_to_vmem [thread:$0]  (!%p810_p13), %s169_s5, 128, %s171_s4, %s156_s7, %s717_s8, %s717_s8, %s718_s15  }
  0x1a   : > { %s466_s16 = sshll.u32 %s801_s25, 4  ;;  %s492_s18 = sshll.u32 %s711_s13, 4 }
  0x1b   : > { %p204_p2 = pnand %p469_p0, %p203_p1  ;;  %s192_s19 = scalar_lea.hbm %s889_s1, %s492_s18 }
  0x1c   : > { %s184_s27 = scalar_lea.vmem [#allocation6], %s466_s16  ;;  %s193_s29 = sshll.u32 %s192_s19, 4  ;;  %s194_s29 = int_to_ptr.hbm [resolvable:$true] %s193_s29 }
  0x1d   : > { %s195_s28 = sshll.u32 %s184_s27, 4  ;;  %s181_s30 = scalar_lea.sflag [#allocation7], %s801_s25  ;;  %s196_s28 = int_to_ptr.vmem [resolvable:$true] %s195_s28 }
  0x1e   : > { %509 = dma.hbm_to_vmem [thread:$0]  (!%p810_p13), %s194_s29, 256, %s196_s28, %s181_s30, %s717_s8, %s717_s8, %s718_s15  }
  0x1f   : > { %207 = sbr.rel (%p204_p2) target bundleno = 198 (0xc6), region = 28  ;;  %s828_s3 = sand.u32 (!%p204_p2), 1, %s699_s10  }
  0x20   : > { %s470_s4 = sshll.u32 (!%p204_p2), %s828_s3, 3  ;;  %s210_s5 = scalar_lea.sflag (!%p204_p2), [#allocation4], %s828_s3 }
  0x21   : > { %s213_s7 = scalar_lea.vmem (!%p204_p2), [#allocation3], %s470_s4 }
  0x24   : > { %682 = dma.done.wait (%p784_p8), %s210_s5, 128  }
  0x25   : > { %684 = vsyncadd (%p784_p8), %s210_s5, 4294967168  ;;  %s471_s25 = sshll.u32 %s828_s3, 4  ;;  %s220_s6 = scalar_lea.sflag [#allocation7], %s828_s3 }
  0x26   : > { %s223_s8 = scalar_lea.vmem [#allocation6], %s471_s25 }
  0x27   : > { %686 = dma.done.wait (%p784_p8), %s220_s6, 256  }
  0x28   : > { %688 = vsyncadd (%p784_p8), %s220_s6, 4294967040  ;;  %vm258_vm0 = vcmask 261120   ;;  %v719_v0 = vmov 0.0   ;;  %v495_v1 = vld [vmem:[%s223_s8 + $0x8] sm:$0xff]  ;;  %v494_v2 = vld [vmem:[%s223_s8] sm:$0xff]  ;;  %s496_s21 = sshll.u32 %s707_s12, 3 }
  0x29   : > { %259 = vst.msk [vmem:[#allocation2] sm:$0xff] %vm258_vm0, %v719_v0  ;;  %296 = vmatpush.bf16.msra.mxu0 %v495_v1  ;;  %v493_v3 = vld [vmem:[%s213_s7] sm:$0xff]  ;;  %vm315_vm1 = vcmask 257024   ;;  %s333_s18 = scalar_lea.hbm %s890_s2, %s496_s21  ;;  %s249_s20 = scalar_lea.vmem [#allocation8], %s470_s4 }
  0x2a   : > { %260 = vst.msk [vmem:[#allocation2 + $0x8] sm:$0xff] %vm258_vm0, %v719_v0  ;;  %s334_s26 = sshll.u32 %s249_s20, 4  ;;  %s336_s19 = sshll.u32 %s333_s18, 4  ;;  %s335_s26 = int_to_ptr.vmem [resolvable:$true] %s334_s26  ;;  %s337_s19 = int_to_ptr.hbm [resolvable:$true] %s336_s19 }
  0x2b   : > { %s319_s12 = scalar_lea.sflag [#allocation5], %s828_s3  ;;  %s643_s27 = sshra.s32 %s337_s19, 4  ;;  %s644_s27 = int_to_ptr.hbm [resolvable:$true] %s643_s27 }
  0x2c   : > { %s645_s28 = scalar_lea.hbm %s644_s27, 8  ;;  %s649_s4 = scalar_lea.hbm %s890_s2, 24 }
  0x2d   : > { %297 = vmatpush.bf16.msra.mxu0 %v494_v2  ;;  %p646_p3 = scmp.ne.s32.totalorder %s644_s27, %s645_s28  ;;  %p650_p6 = scmp.lt.s32.totalorder %s644_s27, %s890_s2 }
  0x2e   : > { %p651_p7 = scmp.lt.s32.totalorder %s649_s4, %s645_s28 }
  0x2f   : > { %p647_p4 = pnand %p646_p3, %p788_p9 }
  0x30   : > { %485 = vmatmul.msk.bf16.vlgmr.msra.gmra.mxu0 %vm258_vm0, %v493_v3  ;;  %v261_v4 = vld [vmem:[#allocation2] sm:$0xff]  ;;  %p652_p8 = por %p651_p7, %p650_p6 }
  0x31   : > { %v262_v7 = vld [vmem:[#allocation2 + $0x8] sm:$0xff]  ;;  %p648_p5 = pneg %p647_p4 }
  0x33   : > { %p653_p10 = pnand %p652_p8, %p648_p5 }
  0xad   : > { %v299_v5 = vpop.f32.mrf.mxu0 }
  0xae   : > { %v304_v6 = vadd.f32 %v299_v5, %v261_v4 }
  0xb0   : > { %306 = vst.msk [vmem:[#allocation2] sm:$0xff] %vm258_vm0, %v304_v6 }
  0xb5   : > { %v301_v8 = vpop.f32.mrf.mxu0 }
  0xb6   : > { %v305_v9 = vadd.f32 %v301_v8, %v262_v7 }
  0xb7   : > { %v311_v10 = vld [vmem:[#allocation2] sm:$0xff] }
  0xb8   : > { %307 = vst.msk [vmem:[#allocation2 + $0x8] sm:$0xff] %vm258_vm0, %v305_v9  ;;  %v313_v11 = vpack.c.bf16 %v311_v10, %v311_v10 }
  0xba   : > { %316 = vst.msk [vmem:[%s249_s20] sm:$0xf] %vm315_vm1, %v313_v11 }
  0xbf   : > { %v312_v12 = vld [vmem:[#allocation2 + $0x8] sm:$0xff] }
  0xc0   : > { %v314_v13 = vpack.c.bf16 %v312_v12, %v312_v12 }
  0xc2   : > { %317 = vst.msk [vmem:[%s249_s20 + $0x4] sm:$0xf] %vm315_vm1, %v314_v13 }
  0xc3   : > { %656 = shalt.err (!%p653_p10)
}
  0xc4   : > { %s720_s3 = smov 64   ;;  %s721_s25 = smov 4  }
  0xc5   : > { %501 = dma.vmem_to_hbm [thread:$0]  (%p788_p9), %s335_s26, 128, %s337_s19, %s319_s12, %s720_s3, %s720_s3, %s721_s25  }
  0xc6 PF: > { %p515_p12 = scmp.ge.s32.totalorder %s715_s14, 2  ;;  %s351_s6 = sand.u32 1, %s695_s9  }
  0xc7   : > { %s352_s8 = scalar_lea.sflag [#allocation5], %s351_s6 }
  0xc8   : > { %p511_p13 = pnand %p515_p12, %p795_p11 }
  0xca   : > { %p512_p0 = pneg %p511_p13 }
  0xcc   : > { %690 = dma.done.wait (%p512_p0), %s352_s8, 128  }
  0xcd   : > { %692 = vsyncadd (%p512_p0), %s352_s8, 4294967168  ;;  %s21_s14 = sadd.s32 1, %s715_s14   ;;  %s896_s9 = smov %s699_s10 }
  0xce   : > { %p18_p1 = scmp.ge.s32.totalorder %s21_s14, 5   ;;  %s897_s10 = smov %s703_s11 }
  0xcf   : > { %s898_s11 = smov %s793_s23  ;;  %s899_s12 = smov %s711_s13 }
  0xd0   : > { %s900_s13 = smov %s902_s17  ;;  %20 = sbr.rel (!%p18_p1) target bundleno = 8 (0x8), region = 94 }
  0xd5   :  { %358 = vsyncpa [#allocation4], 1 }
  0xd6   :  { %360 = vsyncpa [#allocation4 + $0x1], 1 }
  0xd7   :  { %361 = vsyncpa [#allocation7], 1 }
  0xd8   :  { %363 = vsyncpa [#allocation7 + $0x1], 1 }
  0xd9   :  { %364 = vsyncpa [#allocation5], 1 }
  0xda   :  { %366 = vsyncpa [#allocation5 + $0x1], 1 }

</bundles_post_ra>
